<compile_context>
chip_gen: v6e
topology: v6e:2x2x1
jax: 0.10.0
libtpu: 0.0.40
codegen_flags: <defaults>
</compile_context>

<pallas_src>
import functools

import jax
import jax.numpy as jnp
from jax.experimental import pallas as pl
from jax.experimental.pallas import tpu as pltpu


def _round_up(v, m):
    return (v + m - 1) // m * m


def _sublane_multiple(dtype):
    # Minimum sublane granularity per packed dtype width.
    itemsize = jnp.dtype(dtype).itemsize
    return {4: 8, 2: 16, 1: 32}.get(itemsize, 8)


def _vmem_capacity_bytes():
    try:
        return int(pltpu.get_tpu_info().vmem_capacity_bytes)
    except Exception:
        # Conservative fallback = v7x per-TC VMEM; safe on every generation.
        return 64 * 1024 * 1024


def _lora_kernel(x_ref, a_ref, b_ref, o_ref, *, alpha):
    # First MXU matmul, f32 accumulation.
    xa = jnp.dot(x_ref[...], a_ref[...], preferred_element_type=jnp.float32)
    # Scale on the (tm, rank) intermediate (out_dim/rank fewer VPU muls than
    # scaling the (tm, out_dim) result) and cast to B's dtype so bf16 inputs
    # hit the native bf16 MXU path for the second matmul.
    xa = (alpha * xa).astype(b_ref.dtype)
    o_ref[...] = jnp.dot(xa, b_ref[...],
                         preferred_element_type=jnp.float32).astype(o_ref.dtype)


def lora_forward(x, A, B, alpha, *, block_m=None, block_n=None,
                 vmem_budget_bytes=None,
                 bytes_per_step_target=4 * 1024 * 1024):
    """alpha * (x @ A @ B), tiled over (batch, out_dim).

    A (and the current out_dim slice of B) stay VMEM-resident via constant /
    j-only index_maps; x and y are streamed in batch tiles sized from the HBM
    bandwidth target and the per-generation VMEM budget.  Ragged batches are
    handled by a partial final grid block (masked writeback) -- no wrapper-side
    pad/slice copies.

    NOTE: alpha is baked as a static Python constant (fixed hyperparameter);
    a new alpha value retraces.  Pass it as an SMEM scalar if it must be traced.
    """
    batch, in_dim = x.shape
    rank, out_dim = B.shape
    assert A.shape == (in_dim, rank)

    xb = jnp.dtype(x.dtype).itemsize
    ab = jnp.dtype(A.dtype).itemsize
    bb = jnp.dtype(B.dtype).itemsize
    ob = xb  # output written in x.dtype
    sub = _sublane_multiple(x.dtype)

    vmem_cap = _vmem_capacity_bytes()
    if vmem_budget_bytes is None:
        # ~48 MiB on v7x (64 MiB/TC), ~96 MiB on v5e/v6e (128 MiB).
        vmem_budget_bytes = vmem_cap * 3 // 4

    # --- out_dim tile --------------------------------------------------------
    # Full out_dim unless it is LLM-sized and 128-aligned; tiling it bounds the
    # f32 intermediate / y buffers so tm can stay large on the 64 MiB part
    # while stores remain lane-dense (tn multiple of 128).
    if block_n is None:
        tn = 2048 if (out_dim > 2048 and out_dim % 128 == 0) else out_dim
    else:
        tn = min(block_n, out_dim)
    grid_n = pl.cdiv(out_dim, tn)

    # --- batch tile ----------------------------------------------------------
    # Per-row VMEM footprint: double-buffered x and y tiles + f32 result of the
    # second matmul (before downcast) + f32 (tm, rank) xa temp.
    per_row_vmem = 2 * in_dim * xb + 2 * tn * ob + tn * 4 + rank * 4
    resident_vmem = 2 * (in_dim * rank * ab + rank * tn * bb)

    if block_m is None:
        # HBM-bound (arithmetic intensity ~rank/2 FLOPs/byte): stream at least
        # bytes_per_step_target of x+y per step to amortize per-step overhead.
        bytes_per_row = in_dim * xb + tn * ob
        tm = _round_up(max(512, pl.cdiv(bytes_per_step_target, bytes_per_row)),
                       sub)
        # Keep >= 2 batch steps when possible so megacore sharding has work
        # for both TensorCores (v7x).
        if batch >= 2 * sub:
            tm = min(tm, _round_up(pl.cdiv(batch, 2), sub))
    else:
        tm = _round_up(max(block_m, sub), sub)

    # Cap by the per-generation VMEM budget and by the batch itself.
    tm_cap = max(sub, ((vmem_budget_bytes - resident_vmem) // per_row_vmem)
                 // sub * sub)
    tm = max(sub, min(tm, tm_cap, _round_up(batch, sub)))
    grid_m = pl.cdiv(batch, tm)

    kernel = functools.partial(_lora_kernel, alpha=float(alpha))
    return pl.pallas_call(
        kernel,
        out_shape=jax.ShapeDtypeStruct((batch, out_dim), x.dtype),
        grid=(grid_m, grid_n),
        in_specs=[
            # x tile: streamed over i; block index constant across j, so it is
            # NOT re-DMA'd while the out_dim axis iterates.
            pl.BlockSpec((tm, in_dim), lambda i, j: (i, 0)),
            # Low-rank weights: resident (A constant; B slides only with j).
            pl.BlockSpec((in_dim, rank), lambda i, j: (0, 0)),
            pl.BlockSpec((rank, tn), lambda i, j: (0, j)),
        ],
        out_specs=pl.BlockSpec((tm, tn), lambda i, j: (i, j)),
        compiler_params=pltpu.CompilerParams(
            dimension_semantics=("parallel", "parallel"),
            vmem_limit_bytes=int(vmem_budget_bytes),
        ),
    )(x, A, B)


if __name__ == "__main__":
    # Small but tiling-exercising shapes: multiple batch tiles, lane-dense
    # 128-multiple output width, rank << 128 as in real LoRA adapters.
    batch, in_dim, out_dim, rank, alpha = 512, 128, 256, 8, 2.0

    key = jax.random.PRNGKey(0)
    kx, ka, kb = jax.random.split(key, 3)

    # Parameter init mirroring the PyTorch __init__:
    #   A ~ randn(in_dim, rank) / sqrt(rank),  B = zeros(rank, out_dim)
    std_dev = 1.0 / jnp.sqrt(jnp.float32(rank))
    A = jax.random.normal(ka, (in_dim, rank), dtype=jnp.float32) * std_dev
    B0 = jnp.zeros((rank, out_dim), dtype=jnp.float32)
    x = jax.random.normal(kx, (batch, in_dim), dtype=jnp.float32)

    # 1) Module's actual init (B = 0) -> output must be zero.
    out0 = jax.block_until_ready(lora_forward(x, A, B0, alpha))
    assert out0.shape == (batch, out_dim)
    assert jnp.allclose(out0, jnp.zeros_like(out0))

    # 2) Nonzero B, auto tile sizing: exercises both matmuls + alpha scaling.
    Bnz = jax.random.normal(kb, (rank, out_dim), dtype=jnp.float32) * 0.1
    out = jax.block_until_ready(lora_forward(x, A, Bnz, alpha))
    ref = alpha * (x @ (A @ Bnz))
    assert jnp.allclose(out, ref, atol=1e-4, rtol=1e-5)

    # 3) Explicit small tile -> multi-step batch grid.
    out_t = jax.block_until_ready(lora_forward(x, A, Bnz, alpha, block_m=128))
    assert jnp.allclose(out_t, ref, atol=1e-4, rtol=1e-5)

    # 4) Ragged batch: no wrapper pad/slice; final partial block is masked.
    xr = x[:100]
    out_r = jax.block_until_ready(lora_forward(xr, A, Bnz, alpha))
    ref_r = alpha * (xr @ (A @ Bnz))
    assert out_r.shape == (100, out_dim)
    assert jnp.allclose(out_r, ref_r, atol=1e-4, rtol=1e-5)

    # 5) bf16 inputs: native bf16 MXU path (xa cast before the second dot),
    #    dtype-dependent sublane rounding (16), looser tolerance vs f32 ref.
    xb16 = x.astype(jnp.bfloat16)
    Ab16 = A.astype(jnp.bfloat16)
    Bb16 = Bnz.astype(jnp.bfloat16)
    out_b = jax.block_until_ready(lora_forward(xb16, Ab16, Bb16, alpha))
    ref_b = alpha * (xb16.astype(jnp.float32)
                     @ (Ab16.astype(jnp.float32) @ Bb16.astype(jnp.float32)))
    assert out_b.dtype == jnp.bfloat16
    assert jnp.allclose(out_b.astype(jnp.float32), ref_b, atol=0.25, rtol=0.05)

    print("KERNEL_OK")
</pallas_src>

<mosaic_0001>
module attributes {stable_mosaic.version = 11 : i64} {
  func.func @_lora_kernel(%arg0: i32, %arg1: i32, %arg2: memref<256x128xf32, #tpu.memory_space<vmem>>, %arg3: memref<128x8xf32, #tpu.memory_space<vmem>>, %arg4: memref<8x256xf32, #tpu.memory_space<vmem>>, %arg5: memref<256x256xf32, #tpu.memory_space<vmem>>) attributes {dimension_semantics = [#tpu.dimension_semantics<parallel>, #tpu.dimension_semantics<parallel>], iteration_bounds = array<i64: 2, 1>, scalar_prefetch = 0 : i64, scratch_operands = 0 : i64, tpu.core_type = #tpu.core_type<tc>, window_params = [{transform_indices = @transform_0, window_bounds = array<i64: 256, 128>}, {pipeline_mode = #tpu.pipeline_mode<synchronous>, transform_indices = @transform_1, window_bounds = array<i64: 128, 8>}, {transform_indices = @transform_2, window_bounds = array<i64: 8, 256>}, {transform_indices = @transform_3, window_bounds = array<i64: 256, 256>}]} {
    %c0 = arith.constant 0 : index
    %c0_0 = arith.constant 0 : index
    %0 = vector.load %arg2[%c0, %c0_0] : memref<256x128xf32, #tpu.memory_space<vmem>>, vector<256x128xf32>
    %c0_1 = arith.constant 0 : index
    %c0_2 = arith.constant 0 : index
    %1 = vector.load %arg3[%c0_1, %c0_2] : memref<128x8xf32, #tpu.memory_space<vmem>>, vector<128x8xf32>
    %cst = arith.constant dense<0.000000e+00> : vector<256x8xf32>
    %2 = tpu.matmul %0, %1, %cst {dimension_numbers = #tpu.dot_dimension_numbers<[1], [0], [0], [1], [0, 0, 1, 1], [], []>} : vector<256x128xf32>, vector<128x8xf32>, vector<256x8xf32> -> vector<256x8xf32>
    %cst_3 = arith.constant 2.000000e+00 : f32
    %3 = vector.broadcast %cst_3 : f32 to vector<256x8xf32>
    %4 = arith.mulf %3, %2 : vector<256x8xf32>
    %c0_4 = arith.constant 0 : index
    %c0_5 = arith.constant 0 : index
    %5 = vector.load %arg4[%c0_4, %c0_5] : memref<8x256xf32, #tpu.memory_space<vmem>>, vector<8x256xf32>
    %cst_6 = arith.constant dense<0.000000e+00> : vector<256x256xf32>
    %6 = tpu.matmul %4, %5, %cst_6 {dimension_numbers = #tpu.dot_dimension_numbers<[1], [0], [0], [1], [0, 0, 1, 1], [], []>} : vector<256x8xf32>, vector<8x256xf32>, vector<256x256xf32> -> vector<256x256xf32>
    %c0_7 = arith.constant 0 : index
    %c0_8 = arith.constant 0 : index
    %7 = vector.load %arg5[%c0_7, %c0_8] : memref<256x256xf32, #tpu.memory_space<vmem>>, vector<256x256xf32>
    tpu.vector_store %arg5[%c0_7, %c0_8], %6 {strides = array<i32>} : memref<256x256xf32, #tpu.memory_space<vmem>>, vector<256x256xf32>,
    return
  }
  func.func @transform_0(%arg0: i32, %arg1: i32) -> (i32, i32) {
    %c0_i32 = arith.constant 0 : i32
    %c0_i32_0 = arith.constant 0 : i32
    return %arg0, %c0_i32 : i32, i32
  }
  func.func @transform_1(%arg0: i32, %arg1: i32) -> (i32, i32) {
    %c0_i32 = arith.constant 0 : i32
    %c0_i32_0 = arith.constant 0 : i32
    %c0_i32_1 = arith.constant 0 : i32
    return %c0_i32, %c0_i32_0 : i32, i32
  }
  func.func @transform_2(%arg0: i32, %arg1: i32) -> (i32, i32) {
    %c0_i32 = arith.constant 0 : i32
    %c0_i32_0 = arith.constant 0 : i32
    return %c0_i32, %arg1 : i32, i32
  }
  func.func @transform_3(%arg0: i32, %arg1: i32) -> (i32, i32) {
    %c0_i32 = arith.constant 0 : i32
    return %arg0, %arg1 : i32, i32
  }
}

</mosaic_0001>

<bundles_post_ra>
// kernel: tpu_custom_call.1
= control target key start
LH: loop header
LB: loop body
LE: loop exit
PB: predicated region body
PF: predicated region fallthrough
CT: control target
= control target key end

     0   :  { %8 = vsyncpa [#allocation3], 0  ;;  %s1821_s0 = inlined_call_operand.hbm [shape: f32[512,128], index: 0, kind: input, shape index: {}]   ;;  %s1822_s1 = inlined_call_operand.vmem [shape: f32[128,8], index: 1, kind: input, shape index: {}]   ;;  %s1823_s2 = inlined_call_operand.vmem [shape: f32[8,256], index: 2, kind: input, shape index: {}]   ;;  %s1824_s3 = inlined_call_operand.hbm [shape: f32[512,256], index: 3, kind: output, shape index: {}]  }
   0x1   :  { %10 = vsyncpa [#allocation3 + $0x1], 0 }
   0x2   :  { %11 = vsyncpa [#allocation4], 0 }
   0x3   :  { %13 = vsyncpa [#allocation4 + $0x1], 0  ;;  %s1455_s12 = smov 0   ;;  %s1457_s13 = smov 0  }
   0x4   :  { %s1459_s14 = smov 0   ;;  %s1461_s15 = smov 0  }
   0x5   :  { %s1463_s16 = smov 0   ;;  %s1465_s17 = smov 0  }
   0x6 LB: > { %s1069_s18 = sadd.s32 4294967295, %s1426_s17   ;;  %s1070_s19 = sadd.s32 4294967294, %s1426_s17   ;;  %s1426_s17 = sphi %s1465_s17, %s19_s17   ;;  %s1422_s16 = sphi %s1463_s16, %s1835_s16   ;;  %s1418_s15 = sphi %s1461_s15, %s1834_s15   ;;  %s1414_s14 = sphi %s1459_s14, %s1833_s14   ;;  %s1410_s13 = sphi %s1457_s13, %s1832_s13   ;;  %s1406_s12 = sphi %s1455_s12, %s1831_s12  }
   0x7   : > { %s31_s20 = sadd.s32 1, %s1422_s16  ;;  %s38_s21 = sadd.s32 1, %s1414_s14 }
   0x8   : > { %p33_p0 = scmp.ge.s32.totalorder %s31_s20, 2  ;;  %p45_p1 = scmp.ne.s32.totalorder %s1414_s14, %s1410_s13 }
   0x9   : > { %p46_p2 = scmp.eq.s32.totalorder %s1426_s17, 0  ;;  %p51_p3 = scmp.ne.s32.totalorder %s1410_s13, %s1406_s12 }
   0xa   : > { %s1837_s20 = smov (%p33_p0, %s31_s20), 0  ;;  %p52_p5 = scmp.eq.s32.totalorder %s1069_s18, 0 }
   0xb   : > { %p1496_p4 = por %p46_p2, %p45_p1  ;;  %s35_s23 = ssub.s32 %s1422_s16, %s1837_s20 }
   0xc   : > { %p124_p6 = scmp.eq.s32.totalorder %s1069_s18, 1  ;;  %p36_p7 = scmp.eq.s32.totalorder %s35_s23, 0 }
   0xd   : > { %p1502_p8 = por %p52_p5, %p51_p3  ;;  %p130_p10 = scmp.eq.s32.totalorder %s1070_s19, 1 }
   0xe   : > { %p1506_p9 = por %p124_p6, %p45_p1  ;;  %p1263_p13 = scmp.lt.s32.totalorder %s1426_s17, 2 }
   0xf   : > { %s1511_s26 = scalar_select %p36_p7, %s1414_s14, %s38_s21  }
  0x10   : > { %p1513_p11 = por %p130_p10, %p51_p3  ;;  %s162_s28 = sand.u32 1, %s1414_s14  }
  0x11   : > { %s1074_s29 = sshll.u32 %s162_s28, 8  ;;  %s1118_s30 = sshll.u32 %s1422_s16, 12 }
  0x12   : > { %s172_s6 = scalar_lea.hbm %s1821_s0, %s1118_s30  ;;  %s166_s7 = scalar_lea.vmem [#allocation2], %s1074_s29 }
  0x13   : > { %s173_s8 = sshll.u32 %s166_s7, 4  ;;  %p1526_p0 = pnand %p1263_p13, %p1496_p4  ;;  %s174_s8 = int_to_ptr.vmem [resolvable:$true] %s173_s8 }
  0x14   : > { %p1077_p1 = scmp.ge.s32.totalorder %s1426_s17, 1  ;;  %s163_s10 = scalar_lea.sflag [#allocation3], %s162_s28 }
  0x15   : > { %p1320_p2 = pneg %p1526_p0  ;;  %s1331_s11 = scalar_lea.vmem %s174_s8, 4096 }
  0x16   : > { %p1332_p3 = scmp.ne.s32.totalorder %s174_s8, %s1331_s11  ;;  %s1428_s18 = smov [#allocation2]  }
  0x17   : > { %s1336_s19 = sshll.u32 %s1428_s18, 4  ;;  %s1337_s19 = int_to_ptr.vmem [resolvable:$false] %s1336_s19 }
  0x18   : > { %p1334_p5 = pnand %p1332_p3, %p1320_p2  ;;  %s1338_s21 = scalar_lea.vmem %s1337_s19, 8192 }
  0x19   : > { %p1339_p7 = scmp.lt.s32.totalorder %s174_s8, %s1337_s19  ;;  %p1340_p10 = scmp.lt.s32.totalorder %s1338_s21, %s1331_s11 }
  0x1a   : > { %p1335_p6 = pneg %p1334_p5 }
  0x1b   : > { %p1341_p12 = por %p1340_p10, %p1339_p7 }
  0x1d   : > { %p1342_p4 = pnand %p1341_p12, %p1335_p6 }
  0x1f   : > { %1345 = shalt.err (!%p1342_p4)
}
  0x20   : > { %s1429_s22 = smov 128   ;;  %s1430_s23 = smov 8  }
  0x21   : > { %1258 = dma.hbm_to_vmem [thread:$0]  (!%p1526_p0), %s172_s6, 4096, %s174_s8, %s163_s10, %s1429_s22, %s1429_s22, %s1430_s23  }
  0x22   : > { %p181_p13 = scmp.lt.s32.totalorder %s1426_s17, 3 }
  0x24   : > { %p182_p2 = pnand %p1077_p1, %p181_p13 }
  0x25   : > { %s1539_s28 = sand.u32 (!%p182_p2), 1, %s1410_s13  }
  0x26   : > { %185 = sbr.rel (%p182_p2) target bundleno = 599 (0x257), region = 32  ;;  %s1078_s29 = sshll.u32 (!%p182_p2), %s1539_s28, 8 }
  0x27   : > { %s188_s30 = scalar_lea.sflag (!%p182_p2), [#allocation3], %s1539_s28  ;;  %s1543_s4 = scalar_lea.vmem (!%p182_p2), [#allocation2], %s1078_s29 }
  0x2b   : > { %1397 = dma.done.wait (%p1502_p8), %s188_s30, 4096  }
  0x2c   : > { %1399 = vsyncadd (%p1502_p8), %s188_s30, 4294963200  ;;  %v275_v0 = vld [vmem:[%s1822_s1 + $0x78] sm:$0xff]  ;;  %v274_v1 = vld [vmem:[%s1822_s1 + $0x70] sm:$0xff]  ;;  %v1431_v50 = vmov 0.0   ;;  %vm535_vm0 = vcmask 64512   ;;  %s1120_s24 = sshll.u32 %s1418_s15, 13 }
  0x2d   : > { %1169 = vmatprep.subr.mxu0 %v275_v0  ;;  %v273_v2 = vld [vmem:[%s1822_s1 + $0x68] sm:$0xff]  ;;  %v272_v3 = vld [vmem:[%s1822_s1 + $0x60] sm:$0xff]  ;;  %v271_v5 = vld [vmem:[%s1822_s1 + $0x58] sm:$0xff]  ;;  %720 = vmatprep.mubr.f32.mxu1 %v1431_v50  ;;  %s1769_s22 = scalar_lea.hbm %s1824_s3, %s1120_s24  ;;  %s954_s23 = scalar_lea.sflag [#allocation4], %s1539_s28 }
  0x2e   : > { %1170 = vmatpush3.msra.mxu0 %v275_v0  ;;  %v228_v4 = vld [vmem:[%s1543_s4] sm:$0xff]  ;;  %v270_v6 = vld [vmem:[%s1822_s1 + $0x50] sm:$0xff]  ;;  %v269_v7 = vld [vmem:[%s1822_s1 + $0x48] sm:$0xff]  ;;  %s1432_s15 = smov [#allocation5]  }
  0x2f   : > { %1171 = vmatprep.subr.mxu0 %v274_v1  ;;  %1201 = vmatprep.mubr.f32.mxu0 %v228_v4  ;;  %v268_v8 = vld [vmem:[%s1822_s1 + $0x40] sm:$0xff]  ;;  %v267_v9 = vld [vmem:[%s1822_s1 + $0x38] sm:$0xff]  ;;  %v266_v10 = vld [vmem:[%s1822_s1 + $0x30] sm:$0xff]  ;;  %s1350_s30 = sshll.u32 %s1432_s15, 4  ;;  %s1351_s30 = int_to_ptr.vmem [resolvable:$false] %s1350_s30 }
  0x30   : > { %1172 = vmatpush3.msra.mxu0 %v274_v1  ;;  %v265_v11 = vld [vmem:[%s1822_s1 + $0x28] sm:$0xff]  ;;  %v264_v12 = vld [vmem:[%s1822_s1 + $0x20] sm:$0xff]  ;;  %v263_v13 = vld [vmem:[%s1822_s1 + $0x18] sm:$0xff]  ;;  %s1352_s5 = scalar_lea.vmem %s1351_s30, 16384 }
  0x31   : > { %1173 = vmatprep.subr.mxu0 %v273_v2  ;;  %v262_v14 = vld [vmem:[%s1822_s1 + $0x10] sm:$0xff]  ;;  %v261_v15 = vld [vmem:[%s1822_s1 + $0x8] sm:$0xff]  ;;  %v260_v16 = vld [vmem:[%s1822_s1] sm:$0xff] }
  0x32   : > { %1174 = vmatpush3.msra.mxu0 %v273_v2  ;;  %v229_v17 = vld [vmem:[%s1543_s4 + $0x8] sm:$0xff]  ;;  %v230_v18 = vld [vmem:[%s1543_s4 + $0x10] sm:$0xff]  ;;  %v231_v19 = vld [vmem:[%s1543_s4 + $0x18] sm:$0xff] }
  0x33   : > { %1175 = vmatprep.subr.mxu0 %v272_v3  ;;  %v232_v20 = vld [vmem:[%s1543_s4 + $0x20] sm:$0xff]  ;;  %v233_v21 = vld [vmem:[%s1543_s4 + $0x28] sm:$0xff]  ;;  %v234_v22 = vld [vmem:[%s1543_s4 + $0x30] sm:$0xff] }
  0x34   : > { %1176 = vmatpush3.msra.mxu0 %v272_v3  ;;  %v235_v23 = vld [vmem:[%s1543_s4 + $0x38] sm:$0xff]  ;;  %v236_v24 = vld [vmem:[%s1543_s4 + $0x40] sm:$0xff]  ;;  %v237_v25 = vld [vmem:[%s1543_s4 + $0x48] sm:$0xff] }
  0x35   : > { %1177 = vmatprep.subr.mxu0 %v271_v5  ;;  %v238_v26 = vld [vmem:[%s1543_s4 + $0x50] sm:$0xff]  ;;  %v239_v27 = vld [vmem:[%s1543_s4 + $0x58] sm:$0xff]  ;;  %v240_v28 = vld [vmem:[%s1543_s4 + $0x60] sm:$0xff] }
  0x36   : > { %1178 = vmatpush3.msra.mxu0 %v271_v5  ;;  %v241_v29 = vld [vmem:[%s1543_s4 + $0x68] sm:$0xff]  ;;  %v242_v30 = vld [vmem:[%s1543_s4 + $0x70] sm:$0xff]  ;;  %v243_v31 = vld [vmem:[%s1543_s4 + $0x78] sm:$0xff] }
  0x37   : > { %1179 = vmatprep.subr.mxu0 %v270_v6  ;;  %v244_v32 = vld [vmem:[%s1543_s4 + $0x80] sm:$0xff]  ;;  %v245_v33 = vld [vmem:[%s1543_s4 + $0x88] sm:$0xff]  ;;  %v246_v34 = vld [vmem:[%s1543_s4 + $0x90] sm:$0xff] }
  0x38   : > { %1180 = vmatpush3.msra.mxu0 %v270_v6  ;;  %v247_v35 = vld [vmem:[%s1543_s4 + $0x98] sm:$0xff]  ;;  %v248_v36 = vld [vmem:[%s1543_s4 + $0xa0] sm:$0xff]  ;;  %v249_v37 = vld [vmem:[%s1543_s4 + $0xa8] sm:$0xff] }
  0x39   : > { %1181 = vmatprep.subr.mxu0 %v269_v7  ;;  %v250_v38 = vld [vmem:[%s1543_s4 + $0xb0] sm:$0xff]  ;;  %v251_v39 = vld [vmem:[%s1543_s4 + $0xb8] sm:$0xff]  ;;  %v252_v40 = vld [vmem:[%s1543_s4 + $0xc0] sm:$0xff] }
  0x3a   : > { %1182 = vmatpush3.msra.mxu0 %v269_v7  ;;  %v253_v41 = vld [vmem:[%s1543_s4 + $0xc8] sm:$0xff]  ;;  %v254_v42 = vld [vmem:[%s1543_s4 + $0xd0] sm:$0xff]  ;;  %v255_v43 = vld [vmem:[%s1543_s4 + $0xd8] sm:$0xff] }
  0x3b   : > { %1183 = vmatprep.subr.mxu0 %v268_v8  ;;  %v256_v44 = vld [vmem:[%s1543_s4 + $0xe0] sm:$0xff]  ;;  %v257_v45 = vld [vmem:[%s1543_s4 + $0xe8] sm:$0xff]  ;;  %v258_v46 = vld [vmem:[%s1543_s4 + $0xf0] sm:$0xff] }
  0x3c   : > { %1184 = vmatpush3.msra.mxu0 %v268_v8  ;;  %v259_v47 = vld [vmem:[%s1543_s4 + $0xf8] sm:$0xff]  ;;  %v534_v48 = vld [vmem:[%s1823_s2 + $0x8] sm:$0xff]  ;;  %v533_v49 = vld [vmem:[%s1823_s2] sm:$0xff]  ;;  %s1079_s4 = sshll.u32 %s1539_s28, 9 }
  0x3d   : > { %1185 = vmatprep.subr.mxu0 %v267_v9  ;;  %1249 = vmatprep.subr.mxu1 %v534_v48  ;;  %s1700_s11 = scalar_lea.vmem [#allocation5], %s1079_s4 }
  0x3e   : > { %1186 = vmatpush3.msra.mxu0 %v267_v9  ;;  %1250 = vmatpush1.msra.mxu1 %v533_v49  ;;  %s970_s18 = sshll.u32 %s1700_s11, 4  ;;  %s1771_s18 = int_to_ptr.vmem [resolvable:$true] %s970_s18 }
  0x3f   : > { %1187 = vmatprep.subr.mxu0 %v266_v10  ;;  %s1346_s29 = scalar_lea.vmem %s1771_s18, 8192  ;;  %p1353_p1 = scmp.lt.s32.totalorder %s1771_s18, %s1351_s30 }
  0x40   : > { %1188 = vmatpush3.msra.mxu0 %v266_v10  ;;  %p1347_p8 = scmp.ne.s32.totalorder %s1771_s18, %s1346_s29  ;;  %p1354_p3 = scmp.lt.s32.totalorder %s1352_s5, %s1346_s29 }
  0x41   : > { %1189 = vmatprep.subr.mxu0 %v265_v11 }
  0x42   : > { %1190 = vmatpush3.msra.mxu0 %v265_v11  ;;  %p1348_p12 = pnand %p1347_p8, %p1506_p9  ;;  %p1355_p5 = por %p1354_p3, %p1353_p1 }
  0x43   : > { %1191 = vmatprep.subr.mxu0 %v264_v12 }
  0x44   : > { %1192 = vmatpush3.msra.mxu0 %v264_v12  ;;  %p1349_p0 = pneg %p1348_p12 }
  0x45   : > { %1193 = vmatprep.subr.mxu0 %v263_v13 }
  0x46   : > { %1194 = vmatpush3.msra.mxu0 %v263_v13  ;;  %p1356_p6 = pnand %p1355_p5, %p1349_p0 }
  0x47   : > { %1195 = vmatprep.subr.mxu0 %v262_v14 }
  0x48   : > { %1196 = vmatpush3.msra.mxu0 %v262_v14 }
  0x49   : > { %1197 = vmatprep.subr.mxu0 %v261_v15 }
  0x4a   : > { %1198 = vmatpush3.msra.mxu0 %v261_v15 }
  0x4b   : > { %1199 = vmatprep.subr.mxu0 %v260_v16 }
  0x4c   : > { %1200 = vmatpush3.msra.mxu0 %v260_v16 }
  0x4d   : > { %1202 = vmatmul.mubr.f32.vlgmr.msra.gmra.mxu0 %v229_v17  ;;  %662 = vmatprep.subr.mxu0 %v534_v48 }
  0x4e   : > { %1204 = vmatprep.mubr.f32.mxu0 %v230_v18  ;;  %663 = vmatpush1.msra.mxu0 %v533_v49 }
  0x51   : > { %1205 = vmatmul.mubr.f32.gmra.mxu0 %v231_v19 }
  0x52   : > { %1207 = vmatprep.mubr.f32.mxu0 %v232_v20 }
  0x55   : > { %1208 = vmatmul.mubr.f32.gmra.mxu0 %v233_v21 }
  0x56   : > { %1210 = vmatprep.mubr.f32.mxu0 %v234_v22 }
  0x59   : > { %1211 = vmatmul.mubr.f32.gmra.mxu0 %v235_v23 }
  0x5a   : > { %1213 = vmatprep.mubr.f32.mxu0 %v236_v24 }
  0x5d   : > { %1214 = vmatmul.mubr.f32.gmra.mxu0 %v237_v25 }
  0x5e   : > { %1216 = vmatprep.mubr.f32.mxu0 %v238_v26 }
  0x61   : > { %1217 = vmatmul.mubr.f32.gmra.mxu0 %v239_v27 }
  0x62   : > { %1219 = vmatprep.mubr.f32.mxu0 %v240_v28 }
  0x65   : > { %1220 = vmatmul.mubr.f32.gmra.mxu0 %v241_v29 }
  0x66   : > { %1222 = vmatprep.mubr.f32.mxu0 %v242_v30 }
  0x69   : > { %1223 = vmatmul.mubr.f32.gmra.mxu0 %v243_v31 }
  0x6a   : > { %1225 = vmatprep.mubr.f32.mxu0 %v244_v32 }
  0x6d   : > { %1226 = vmatmul.mubr.f32.gmra.mxu0 %v245_v33 }
  0x6e   : > { %1228 = vmatprep.mubr.f32.mxu0 %v246_v34 }
  0x71   : > { %1229 = vmatmul.mubr.f32.gmra.mxu0 %v247_v35 }
  0x72   : > { %1231 = vmatprep.mubr.f32.mxu0 %v248_v36 }
  0x75   : > { %1232 = vmatmul.mubr.f32.gmra.mxu0 %v249_v37 }
  0x76   : > { %1234 = vmatprep.mubr.f32.mxu0 %v250_v38 }
  0x79   : > { %1235 = vmatmul.mubr.f32.gmra.mxu0 %v251_v39 }
  0x7a   : > { %1237 = vmatprep.mubr.f32.mxu0 %v252_v40 }
  0x7d   : > { %1238 = vmatmul.mubr.f32.gmra.mxu0 %v253_v41 }
  0x7e   : > { %1240 = vmatprep.mubr.f32.mxu0 %v254_v42 }
  0x81   : > { %1241 = vmatmul.mubr.f32.gmra.mxu0 %v255_v43 }
  0x82   : > { %1243 = vmatprep.mubr.f32.mxu0 %v256_v44 }
  0x85   : > { %1244 = vmatmul.mubr.f32.gmra.mxu0 %v257_v45 }
  0x86   : > { %1246 = vmatprep.mubr.f32.mxu0 %v258_v46 }
  0x89   : > { %1247 = vmatmul.mubr.f32.gmra.mxu0 %v259_v47 }
  0x8a   : > { %696 = vmatprep.mubr.f32.mxu0 %v1431_v50 }
 0x10d   : > { %v1203_v51 = vpop.f32.mrf.mxu0 }
 0x10e   : > { %v502_v56 = vmul.f32 2.0, %v1203_v51 }
 0x10f   : > { %v342_v52 = vpop.f32.mrf.mxu0 }
 0x110   : > { %v501_v53 = vmul.f32 2.0, %v342_v52 }
 0x111   : > { %v1206_v54 = vpop.f32.mrf.mxu0 }
 0x112   : > { %1080 = vmatmul.mubr.msk.f32.vlgmr.msra.gmra.mxu0 %vm535_vm0, %v501_v53  ;;  %v504_v62 = vmul.f32 2.0, %v1206_v54 }
 0x113   : > { %v352_v55 = vpop.f32.mrf.mxu0  ;;  %702 = vmatprep.mubr.f32.mxu0 %v1431_v50 }
 0x114   : > { %v503_v59 = vmul.f32 2.0, %v352_v55 }
 0x115   : > { %v1209_v57 = vpop.f32.mrf.mxu0 }
 0x116   : > { %1081 = vmatmul.mubr.msk.f32.gmra.mxu0 %vm535_vm0, %v502_v56  ;;  %v506_v63 = vmul.f32 2.0, %v1209_v57 }
 0x117   : > { %v362_v58 = vpop.f32.mrf.mxu0  ;;  %708 = vmatprep.mubr.f32.mxu0 %v1431_v50 }
 0x118   : > { %v505_v60 = vmul.f32 2.0, %v362_v58 }
 0x119   : > { %v1212_v61 = vpop.f32.mrf.mxu0 }
 0x11a   : > { %1082 = vmatmul.mubr.msk.f32.gmra.mxu0 %vm535_vm0, %v503_v59  ;;  %1084 = vmatmul.mubr.msk.f32.vlgmr.msra.gmra.mxu1 %vm535_vm0, %v505_v60  ;;  %v508_v3 = vmul.f32 2.0, %v1212_v61 }
 0x11b   : > { %714 = vmatprep.mubr.f32.mxu0 %v1431_v50  ;;  %726 = vmatprep.mubr.f32.mxu1 %v1431_v50  ;;  %v372_v0 = vpop.f32.mrf.mxu0 }
 0x11c   : > { %v507_v1 = vmul.f32 2.0, %v372_v0 }
 0x11d   : > { %v1215_v2 = vpop.f32.mrf.mxu0 }
 0x11e   : > { %1083 = vmatmul.mubr.msk.f32.gmra.mxu0 %vm535_vm0, %v504_v62  ;;  %1085 = vmatmul.mubr.msk.f32.gmra.mxu1 %vm535_vm0, %v506_v63  ;;  %v510_v7 = vmul.f32 2.0, %v1215_v2 }
 0x11f   : > { %732 = vmatprep.mubr.f32.mxu1 %v1431_v50  ;;  %v382_v4 = vpop.f32.mrf.mxu0 }
 0x120   : > { %v509_v5 = vmul.f32 2.0, %v382_v4 }
 0x121   : > { %v1218_v6 = vpop.f32.mrf.mxu0 }
 0x122   : > { %1086 = vmatmul.mubr.msk.f32.gmra.mxu1 %vm535_vm0, %v507_v1  ;;  %v512_v11 = vmul.f32 2.0, %v1218_v6 }
 0x123   : > { %738 = vmatprep.mubr.f32.mxu1 %v1431_v50  ;;  %v392_v8 = vpop.f32.mrf.mxu0 }
 0x124   : > { %v511_v9 = vmul.f32 2.0, %v392_v8 }
 0x125   : > { %v1221_v10 = vpop.f32.mrf.mxu0 }
 0x126   : > { %1087 = vmatmul.mubr.msk.f32.gmra.mxu1 %vm535_vm0, %v508_v3  ;;  %v514_v15 = vmul.f32 2.0, %v1221_v10 }
 0x127   : > { %744 = vmatprep.mubr.f32.mxu1 %v1431_v50  ;;  %v402_v12 = vpop.f32.mrf.mxu0 }
 0x128   : > { %v513_v13 = vmul.f32 2.0, %v402_v12 }
 0x129   : > { %v1224_v14 = vpop.f32.mrf.mxu0 }
 0x12a   : > { %1088 = vmatmul.mubr.msk.f32.gmra.mxu1 %vm535_vm0, %v509_v5  ;;  %v516_v19 = vmul.f32 2.0, %v1224_v14 }
 0x12b   : > { %750 = vmatprep.mubr.f32.mxu1 %v1431_v50  ;;  %v412_v16 = vpop.f32.mrf.mxu0 }
 0x12c   : > { %v515_v17 = vmul.f32 2.0, %v412_v16 }
 0x12d   : > { %v1227_v18 = vpop.f32.mrf.mxu0 }
 0x12e   : > { %1089 = vmatmul.mubr.msk.f32.gmra.mxu1 %vm535_vm0, %v510_v7  ;;  %v518_v23 = vmul.f32 2.0, %v1227_v18 }
 0x12f   : > { %756 = vmatprep.mubr.f32.mxu1 %v1431_v50  ;;  %v422_v20 = vpop.f32.mrf.mxu0 }
 0x130   : > { %v517_v21 = vmul.f32 2.0, %v422_v20 }
 0x131   : > { %v1230_v22 = vpop.f32.mrf.mxu0 }
 0x132   : > { %1090 = vmatmul.mubr.msk.f32.gmra.mxu1 %vm535_vm0, %v511_v9  ;;  %v520_v27 = vmul.f32 2.0, %v1230_v22 }
 0x133   : > { %762 = vmatprep.mubr.f32.mxu1 %v1431_v50  ;;  %v432_v24 = vpop.f32.mrf.mxu0 }
 0x134   : > { %v519_v25 = vmul.f32 2.0, %v432_v24 }
 0x135   : > { %v1233_v26 = vpop.f32.mrf.mxu0 }
 0x136   : > { %1091 = vmatmul.mubr.msk.f32.gmra.mxu1 %vm535_vm0, %v512_v11  ;;  %v522_v31 = vmul.f32 2.0, %v1233_v26 }
 0x137   : > { %768 = vmatprep.mubr.f32.mxu1 %v1431_v50  ;;  %v442_v28 = vpop.f32.mrf.mxu0 }
 0x138   : > { %v521_v29 = vmul.f32 2.0, %v442_v28 }
 0x139   : > { %v1236_v30 = vpop.f32.mrf.mxu0 }
 0x13a   : > { %1092 = vmatmul.mubr.msk.f32.gmra.mxu1 %vm535_vm0, %v513_v13  ;;  %v524_v35 = vmul.f32 2.0, %v1236_v30 }
 0x13b   : > { %774 = vmatprep.mubr.f32.mxu1 %v1431_v50  ;;  %v452_v32 = vpop.f32.mrf.mxu0 }
 0x13c   : > { %v523_v33 = vmul.f32 2.0, %v452_v32 }
 0x13d   : > { %v1239_v34 = vpop.f32.mrf.mxu0 }
 0x13e   : > { %1093 = vmatmul.mubr.msk.f32.gmra.mxu1 %vm535_vm0, %v514_v15  ;;  %v526_v39 = vmul.f32 2.0, %v1239_v34 }
 0x13f   : > { %780 = vmatprep.mubr.f32.mxu1 %v1431_v50  ;;  %v462_v36 = vpop.f32.mrf.mxu0 }
 0x140   : > { %v525_v37 = vmul.f32 2.0, %v462_v36 }
 0x141   : > { %v1242_v38 = vpop.f32.mrf.mxu0 }
 0x142   : > { %1094 = vmatmul.mubr.msk.f32.gmra.mxu1 %vm535_vm0, %v515_v17  ;;  %v528_v43 = vmul.f32 2.0, %v1242_v38 }
 0x143   : > { %786 = vmatprep.mubr.f32.mxu1 %v1431_v50  ;;  %v472_v40 = vpop.f32.mrf.mxu0 }
 0x144   : > { %v527_v41 = vmul.f32 2.0, %v472_v40 }
 0x145   : > { %v1245_v42 = vpop.f32.mrf.mxu0 }
 0x146   : > { %1095 = vmatmul.mubr.msk.f32.gmra.mxu1 %vm535_vm0, %v516_v19  ;;  %v530_v47 = vmul.f32 2.0, %v1245_v42 }
 0x147   : > { %792 = vmatprep.mubr.f32.mxu1 %v1431_v50  ;;  %v482_v44 = vpop.f32.mrf.mxu0 }
 0x148   : > { %v529_v45 = vmul.f32 2.0, %v482_v44 }
 0x149   : > { %v1248_v46 = vpop.f32.mrf.mxu0 }
 0x14a   : > { %1096 = vmatmul.mubr.msk.f32.gmra.mxu1 %vm535_vm0, %v517_v21  ;;  %v532_v51 = vmul.f32 2.0, %v1248_v46 }
 0x14b   : > { %798 = vmatprep.mubr.f32.mxu1 %v1431_v50  ;;  %v492_v48 = vpop.f32.mrf.mxu0 }
 0x14c   : > { %v531_v49 = vmul.f32 2.0, %v492_v48 }
 0x14e   : > { %1097 = vmatmul.mubr.msk.f32.gmra.mxu1 %vm535_vm0, %v518_v23 }
 0x14f   : > { %804 = vmatprep.mubr.f32.mxu1 %v1431_v50 }
 0x152   : > { %1098 = vmatmul.mubr.msk.f32.gmra.mxu1 %vm535_vm0, %v519_v25 }
 0x153   : > { %810 = vmatprep.mubr.f32.mxu1 %v1431_v50 }
 0x156   : > { %1099 = vmatmul.mubr.msk.f32.gmra.mxu1 %vm535_vm0, %v520_v27 }
 0x157   : > { %816 = vmatprep.mubr.f32.mxu1 %v1431_v50 }
 0x15a   : > { %1100 = vmatmul.mubr.msk.f32.gmra.mxu1 %vm535_vm0, %v521_v29 }
 0x15b   : > { %822 = vmatprep.mubr.f32.mxu1 %v1431_v50 }
 0x15e   : > { %1101 = vmatmul.mubr.msk.f32.gmra.mxu1 %vm535_vm0, %v522_v31 }
 0x15f   : > { %828 = vmatprep.mubr.f32.mxu1 %v1431_v50 }
 0x162   : > { %1102 = vmatmul.mubr.msk.f32.gmra.mxu1 %vm535_vm0, %v523_v33 }
 0x163   : > { %834 = vmatprep.mubr.f32.mxu1 %v1431_v50 }
 0x166   : > { %1103 = vmatmul.mubr.msk.f32.gmra.mxu1 %vm535_vm0, %v524_v35 }
 0x167   : > { %840 = vmatprep.mubr.f32.mxu1 %v1431_v50 }
 0x16a   : > { %1104 = vmatmul.mubr.msk.f32.gmra.mxu1 %vm535_vm0, %v525_v37 }
 0x16b   : > { %846 = vmatprep.mubr.f32.mxu1 %v1431_v50 }
 0x16e   : > { %1105 = vmatmul.mubr.msk.f32.gmra.mxu1 %vm535_vm0, %v526_v39 }
 0x16f   : > { %852 = vmatprep.mubr.f32.mxu1 %v1431_v50 }
 0x172   : > { %1106 = vmatmul.mubr.msk.f32.gmra.mxu1 %vm535_vm0, %v527_v41 }
 0x173   : > { %858 = vmatprep.mubr.f32.mxu1 %v1431_v50 }
 0x176   : > { %1107 = vmatmul.mubr.msk.f32.gmra.mxu1 %vm535_vm0, %v528_v43 }
 0x177   : > { %864 = vmatprep.mubr.f32.mxu1 %v1431_v50 }
 0x17a   : > { %1108 = vmatmul.mubr.msk.f32.gmra.mxu1 %vm535_vm0, %v529_v45 }
 0x17b   : > { %870 = vmatprep.mubr.f32.mxu1 %v1431_v50 }
 0x17e   : > { %1109 = vmatmul.mubr.msk.f32.gmra.mxu1 %vm535_vm0, %v530_v47 }
 0x17f   : > { %876 = vmatprep.mubr.f32.mxu1 %v1431_v50 }
 0x182   : > { %1110 = vmatmul.mubr.msk.f32.gmra.mxu1 %vm535_vm0, %v531_v49 }
 0x183   : > { %882 = vmatprep.mubr.f32.mxu1 %v1431_v50 }
 0x186   : > { %1111 = vmatmul.mubr.msk.f32.gmra.mxu1 %vm535_vm0, %v532_v51 }
 0x1d2   : > { %v698_v52 = vpop.f32.mrf.mxu0 }
 0x1d3   : > { %889 = vst [vmem:[%s1700_s11] sm:$0xff] %v698_v52 }
 0x1d4   : > { %v700_v53 = vpop.f32.mrf.mxu0 }
 0x1d5   : > { %890 = vst [vmem:[%s1700_s11 + $0x8] sm:$0xff] %v700_v53 }
 0x1d6   : > { %v704_v50 = vpop.f32.mrf.mxu0 }
 0x1d7   : > { %891 = vst [vmem:[%s1700_s11 + $0x10] sm:$0xff] %v704_v50 }
 0x1d8   : > { %v706_v54 = vpop.f32.mrf.mxu0 }
 0x1d9   : > { %892 = vst [vmem:[%s1700_s11 + $0x18] sm:$0xff] %v706_v54 }
 0x1da   : > { %v710_v55 = vpop.f32.mrf.mxu0  ;;  %v722_v56 = vpop.f32.mrf.mxu1 }
 0x1db   : > { %893 = vst [vmem:[%s1700_s11 + $0x20] sm:$0xff] %v710_v55  ;;  %897 = vst [vmem:[%s1700_s11 + $0x40] sm:$0xff] %v722_v56 }
 0x1dc   : > { %v712_v57 = vpop.f32.mrf.mxu0  ;;  %v724_v58 = vpop.f32.mrf.mxu1 }
 0x1dd   : > { %894 = vst [vmem:[%s1700_s11 + $0x28] sm:$0xff] %v712_v57  ;;  %898 = vst [vmem:[%s1700_s11 + $0x48] sm:$0xff] %v724_v58 }
 0x1de   : > { %v716_v59 = vpop.f32.mrf.mxu0  ;;  %v728_v60 = vpop.f32.mrf.mxu1 }
 0x1df   : > { %895 = vst [vmem:[%s1700_s11 + $0x30] sm:$0xff] %v716_v59  ;;  %899 = vst [vmem:[%s1700_s11 + $0x50] sm:$0xff] %v728_v60 }
 0x1e0   : > { %v718_v61 = vpop.f32.mrf.mxu0  ;;  %v730_v62 = vpop.f32.mrf.mxu1 }
 0x1e1   : > { %896 = vst [vmem:[%s1700_s11 + $0x38] sm:$0xff] %v718_v61  ;;  %900 = vst [vmem:[%s1700_s11 + $0x58] sm:$0xff] %v730_v62 }
 0x1e2   : > { %v734_v63 = vpop.f32.mrf.mxu1 }
 0x1e3   : > { %901 = vst [vmem:[%s1700_s11 + $0x60] sm:$0xff] %v734_v63 }
 0x1e4   : > { %v736_v0 = vpop.f32.mrf.mxu1 }
 0x1e5   : > { %902 = vst [vmem:[%s1700_s11 + $0x68] sm:$0xff] %v736_v0 }
 0x1e6   : > { %v740_v1 = vpop.f32.mrf.mxu1 }
 0x1e7   : > { %903 = vst [vmem:[%s1700_s11 + $0x70] sm:$0xff] %v740_v1 }
 0x1e8   : > { %v742_v2 = vpop.f32.mrf.mxu1 }
 0x1e9   : > { %904 = vst [vmem:[%s1700_s11 + $0x78] sm:$0xff] %v742_v2 }
 0x1ea   : > { %v746_v3 = vpop.f32.mrf.mxu1 }
 0x1eb   : > { %905 = vst [vmem:[%s1700_s11 + $0x80] sm:$0xff] %v746_v3 }
 0x1ec   : > { %v748_v4 = vpop.f32.mrf.mxu1 }
 0x1ed   : > { %906 = vst [vmem:[%s1700_s11 + $0x88] sm:$0xff] %v748_v4 }
 0x1ee   : > { %v752_v5 = vpop.f32.mrf.mxu1 }
 0x1ef   : > { %907 = vst [vmem:[%s1700_s11 + $0x90] sm:$0xff] %v752_v5 }
 0x1f0   : > { %v754_v6 = vpop.f32.mrf.mxu1 }
 0x1f1   : > { %908 = vst [vmem:[%s1700_s11 + $0x98] sm:$0xff] %v754_v6 }
 0x1f2   : > { %v758_v7 = vpop.f32.mrf.mxu1 }
 0x1f3   : > { %909 = vst [vmem:[%s1700_s11 + $0xa0] sm:$0xff] %v758_v7 }
 0x1f4   : > { %v760_v8 = vpop.f32.mrf.mxu1 }
 0x1f5   : > { %910 = vst [vmem:[%s1700_s11 + $0xa8] sm:$0xff] %v760_v8 }
 0x1f6   : > { %v764_v9 = vpop.f32.mrf.mxu1 }
 0x1f7   : > { %911 = vst [vmem:[%s1700_s11 + $0xb0] sm:$0xff] %v764_v9 }
 0x1f8   : > { %v766_v10 = vpop.f32.mrf.mxu1 }
 0x1f9   : > { %912 = vst [vmem:[%s1700_s11 + $0xb8] sm:$0xff] %v766_v10 }
 0x1fa   : > { %v770_v11 = vpop.f32.mrf.mxu1 }
 0x1fb   : > { %913 = vst [vmem:[%s1700_s11 + $0xc0] sm:$0xff] %v770_v11 }
 0x1fc   : > { %v772_v12 = vpop.f32.mrf.mxu1 }
 0x1fd   : > { %914 = vst [vmem:[%s1700_s11 + $0xc8] sm:$0xff] %v772_v12 }
 0x1fe   : > { %v776_v13 = vpop.f32.mrf.mxu1 }
 0x1ff   : > { %915 = vst [vmem:[%s1700_s11 + $0xd0] sm:$0xff] %v776_v13 }
 0x200   : > { %v778_v14 = vpop.f32.mrf.mxu1 }
 0x201   : > { %916 = vst [vmem:[%s1700_s11 + $0xd8] sm:$0xff] %v778_v14 }
 0x202   : > { %v782_v15 = vpop.f32.mrf.mxu1 }
 0x203   : > { %917 = vst [vmem:[%s1700_s11 + $0xe0] sm:$0xff] %v782_v15 }
 0x204   : > { %v784_v16 = vpop.f32.mrf.mxu1 }
 0x205   : > { %918 = vst [vmem:[%s1700_s11 + $0xe8] sm:$0xff] %v784_v16 }
 0x206   : > { %v788_v17 = vpop.f32.mrf.mxu1 }
 0x207   : > { %919 = vst [vmem:[%s1700_s11 + $0xf0] sm:$0xff] %v788_v17 }
 0x208   : > { %v790_v18 = vpop.f32.mrf.mxu1 }
 0x209   : > { %920 = vst [vmem:[%s1700_s11 + $0xf8] sm:$0xff] %v790_v18 }
 0x20a   : > { %v794_v19 = vpop.f32.mrf.mxu1 }
 0x20b   : > { %921 = vst [vmem:[%s1700_s11 + $0x100] sm:$0xff] %v794_v19 }
 0x20c   : > { %v796_v20 = vpop.f32.mrf.mxu1 }
 0x20d   : > { %922 = vst [vmem:[%s1700_s11 + $0x108] sm:$0xff] %v796_v20 }
 0x20e   : > { %v800_v21 = vpop.f32.mrf.mxu1 }
 0x20f   : > { %923 = vst [vmem:[%s1700_s11 + $0x110] sm:$0xff] %v800_v21 }
 0x210   : > { %v802_v22 = vpop.f32.mrf.mxu1 }
 0x211   : > { %924 = vst [vmem:[%s1700_s11 + $0x118] sm:$0xff] %v802_v22 }
 0x212   : > { %v806_v23 = vpop.f32.mrf.mxu1 }
 0x213   : > { %925 = vst [vmem:[%s1700_s11 + $0x120] sm:$0xff] %v806_v23 }
 0x214   : > { %v808_v24 = vpop.f32.mrf.mxu1 }
 0x215   : > { %926 = vst [vmem:[%s1700_s11 + $0x128] sm:$0xff] %v808_v24 }
 0x216   : > { %v812_v25 = vpop.f32.mrf.mxu1 }
 0x217   : > { %927 = vst [vmem:[%s1700_s11 + $0x130] sm:$0xff] %v812_v25 }
 0x218   : > { %v814_v26 = vpop.f32.mrf.mxu1 }
 0x219   : > { %928 = vst [vmem:[%s1700_s11 + $0x138] sm:$0xff] %v814_v26 }
 0x21a   : > { %v818_v27 = vpop.f32.mrf.mxu1 }
 0x21b   : > { %929 = vst [vmem:[%s1700_s11 + $0x140] sm:$0xff] %v818_v27 }
 0x21c   : > { %v820_v28 = vpop.f32.mrf.mxu1 }
 0x21d   : > { %930 = vst [vmem:[%s1700_s11 + $0x148] sm:$0xff] %v820_v28 }
 0x21e   : > { %v824_v29 = vpop.f32.mrf.mxu1 }
 0x21f   : > { %931 = vst [vmem:[%s1700_s11 + $0x150] sm:$0xff] %v824_v29 }
 0x220   : > { %v826_v30 = vpop.f32.mrf.mxu1 }
 0x221   : > { %932 = vst [vmem:[%s1700_s11 + $0x158] sm:$0xff] %v826_v30 }
 0x222   : > { %v830_v31 = vpop.f32.mrf.mxu1 }
 0x223   : > { %933 = vst [vmem:[%s1700_s11 + $0x160] sm:$0xff] %v830_v31 }
 0x224   : > { %v832_v32 = vpop.f32.mrf.mxu1 }
 0x225   : > { %934 = vst [vmem:[%s1700_s11 + $0x168] sm:$0xff] %v832_v32 }
 0x226   : > { %v836_v33 = vpop.f32.mrf.mxu1 }
 0x227   : > { %935 = vst [vmem:[%s1700_s11 + $0x170] sm:$0xff] %v836_v33 }
 0x228   : > { %v838_v34 = vpop.f32.mrf.mxu1 }
 0x229   : > { %936 = vst [vmem:[%s1700_s11 + $0x178] sm:$0xff] %v838_v34 }
 0x22a   : > { %v842_v35 = vpop.f32.mrf.mxu1 }
 0x22b   : > { %937 = vst [vmem:[%s1700_s11 + $0x180] sm:$0xff] %v842_v35 }
 0x22c   : > { %v844_v36 = vpop.f32.mrf.mxu1 }
 0x22d   : > { %938 = vst [vmem:[%s1700_s11 + $0x188] sm:$0xff] %v844_v36 }
 0x22e   : > { %v848_v37 = vpop.f32.mrf.mxu1 }
 0x22f   : > { %939 = vst [vmem:[%s1700_s11 + $0x190] sm:$0xff] %v848_v37 }
 0x230   : > { %v850_v38 = vpop.f32.mrf.mxu1 }
 0x231   : > { %940 = vst [vmem:[%s1700_s11 + $0x198] sm:$0xff] %v850_v38 }
 0x232   : > { %v854_v39 = vpop.f32.mrf.mxu1 }
 0x233   : > { %941 = vst [vmem:[%s1700_s11 + $0x1a0] sm:$0xff] %v854_v39 }
 0x234   : > { %v856_v40 = vpop.f32.mrf.mxu1 }
 0x235   : > { %942 = vst [vmem:[%s1700_s11 + $0x1a8] sm:$0xff] %v856_v40 }
 0x236   : > { %v860_v41 = vpop.f32.mrf.mxu1 }
 0x237   : > { %943 = vst [vmem:[%s1700_s11 + $0x1b0] sm:$0xff] %v860_v41 }
 0x238   : > { %v862_v42 = vpop.f32.mrf.mxu1 }
 0x239   : > { %944 = vst [vmem:[%s1700_s11 + $0x1b8] sm:$0xff] %v862_v42 }
 0x23a   : > { %v866_v43 = vpop.f32.mrf.mxu1 }
 0x23b   : > { %945 = vst [vmem:[%s1700_s11 + $0x1c0] sm:$0xff] %v866_v43 }
 0x23c   : > { %v868_v44 = vpop.f32.mrf.mxu1 }
 0x23d   : > { %946 = vst [vmem:[%s1700_s11 + $0x1c8] sm:$0xff] %v868_v44 }
 0x23e   : > { %v872_v45 = vpop.f32.mrf.mxu1 }
 0x23f   : > { %947 = vst [vmem:[%s1700_s11 + $0x1d0] sm:$0xff] %v872_v45 }
 0x240   : > { %v874_v46 = vpop.f32.mrf.mxu1 }
 0x241   : > { %948 = vst [vmem:[%s1700_s11 + $0x1d8] sm:$0xff] %v874_v46 }
 0x242   : > { %v878_v47 = vpop.f32.mrf.mxu1 }
 0x243   : > { %949 = vst [vmem:[%s1700_s11 + $0x1e0] sm:$0xff] %v878_v47 }
 0x244   : > { %v880_v48 = vpop.f32.mrf.mxu1 }
 0x245   : > { %950 = vst [vmem:[%s1700_s11 + $0x1e8] sm:$0xff] %v880_v48 }
 0x246   : > { %v884_v49 = vpop.f32.mrf.mxu1 }
 0x247   : > { %951 = vst [vmem:[%s1700_s11 + $0x1f0] sm:$0xff] %v884_v49 }
 0x248   : > { %v886_v51 = vpop.f32.mrf.mxu1 }
 0x249   : > { %952 = vst [vmem:[%s1700_s11 + $0x1f8] sm:$0xff] %v886_v51 }
 0x24a   : > { %1359 = shalt.err (!%p1356_p6)
}
 0x24b   : > { %s1360_s6 = scalar_lea.hbm %s1769_s22, 8192  ;;  %s1364_s9 = scalar_lea.hbm %s1824_s3, 16384 }
 0x24c   : > { %p1361_p7 = scmp.ne.s32.totalorder %s1769_s22, %s1360_s6  ;;  %p1365_p13 = scmp.lt.s32.totalorder %s1769_s22, %s1824_s3 }
 0x24d   : > { %p1366_p2 = scmp.lt.s32.totalorder %s1364_s9, %s1360_s6 }
 0x24e   : > { %p1362_p10 = pnand %p1361_p7, %p1506_p9 }
 0x24f   : > { %p1367_p8 = por %p1366_p2, %p1365_p13 }
 0x250   : > { %p1363_p4 = pneg %p1362_p10 }
 0x252   : > { %p1368_p12 = pnand %p1367_p8, %p1363_p4 }
 0x254   : > { %1371 = shalt.err (!%p1368_p12)
}
 0x255   : > { %s1433_s11 = smov 256   ;;  %s1434_s24 = smov 16  }
 0x256   : > { %1253 = dma.vmem_to_hbm [thread:$0]  (%p1506_p9), %s1771_s18, 8192, %s1769_s22, %s954_s23, %s1433_s11, %s1433_s11, %s1434_s24  }
 0x257 PF: > { %s985_s19 = sand.u32 1, %s1406_s12   ;;  %p1830_p0 = scmp.ge.s32.totalorder %s1426_s17, 2 }
 0x258   : > { %s986_s21 = scalar_lea.sflag [#allocation4], %s985_s19 }
 0x259   : > { %p1260_p1 = pnand %p1830_p0, %p1513_p11 }
 0x25b   : > { %p1261_p3 = pneg %p1260_p1 }
 0x25d   : > { %1401 = dma.done.wait (%p1261_p3), %s986_s21, 8192  }
 0x25e   : > { %1403 = vsyncadd (%p1261_p3), %s986_s21, 4294959104  ;;  %s19_s17 = sadd.s32 1, %s1426_s17   ;;  %s1831_s12 = smov %s1410_s13 }
 0x25f   : > { %p16_p5 = scmp.ge.s32.totalorder %s19_s17, 4   ;;  %s1832_s13 = smov %s1414_s14 }
 0x260   : > { %s1833_s14 = smov %s1511_s26  ;;  %s1834_s15 = smov %s1422_s16 }
 0x261   : > { %s1835_s16 = smov %s1837_s20  ;;  %18 = sbr.rel (!%p16_p5) target bundleno = 6 (0x6), region = 80 }
 0x266   :  { %991 = vsyncpa [#allocation3], 1 }
 0x267   :  { %993 = vsyncpa [#allocation3 + $0x1], 1 }
 0x268   :  { %994 = vsyncpa [#allocation4], 1 }
 0x269   :  { %996 = vsyncpa [#allocation4 + $0x1], 1 }

</bundles_post_ra>
